<compile_context>
chip_gen: v6e
topology: v6e:2x2x1
jax: 0.10.0
libtpu: 0.0.40
codegen_flags: <defaults>
</compile_context>

<pallas_src>
import jax
import jax.numpy as jnp
from jax.experimental import pallas as pl
from jax.experimental.pallas import tpu as pltpu


def _round_up(x: int, m: int) -> int:
    return ((x + m - 1) // m) * m


def dqn_kernel(x_ref, w1_ref, w2_ref, b_ref, o_ref):
    # x_ref:  (tb, in_dim)            fp32  (cast to bf16 in-kernel)
    # w1_ref: (in_dim, H_PAD)         bf16  (hidden padded to 128)
    # w2_ref: (H_PAD, O_PAD)          bf16  (output padded to 128 for the MXU)
    # b_ref:  (2, max(H_PAD, O_PAD))  fp32  (row 0 = b1, row 1 = b2)
    # o_ref:  (tb, out_dim)           fp32  (true output width)
    h_pad = w1_ref.shape[1]
    o_pad = w2_ref.shape[1]
    out_dim = o_ref.shape[1]

    b1 = b_ref[0:1, :h_pad]
    b2 = b_ref[1:2, :o_pad]

    x = x_ref[...].astype(jnp.bfloat16)
    h = jnp.dot(x, w1_ref[...], preferred_element_type=jnp.float32) + b1
    h = jnp.maximum(h, 0.0)
    out = jnp.dot(h.astype(jnp.bfloat16), w2_ref[...],
                  preferred_element_type=jnp.float32) + b2
    o_ref[...] = out[:, :out_dim]


def prepare_dqn_params(w1, b1, w2, b2):
    """One-time: pad hidden/output to 128, cast weights to bf16, stack biases.

    w1: (in_dim, hidden)  b1: (hidden,)  w2: (hidden, out_dim)  b2: (out_dim,)
    (math layout x @ W + b; PyTorch's (out, in) weights would be pre-transposed).
    """
    in_dim, hidden = w1.shape
    out_dim = w2.shape[1]
    h_pad = _round_up(hidden, 128)
    o_pad = _round_up(out_dim, 128)
    bw = max(h_pad, o_pad)

    w1p = jnp.zeros((in_dim, h_pad), jnp.float32).at[:, :hidden].set(w1)
    w2p = jnp.zeros((h_pad, o_pad), jnp.float32).at[:hidden, :out_dim].set(w2)
    bb = jnp.zeros((2, bw), jnp.float32)
    bb = bb.at[0, :hidden].set(b1.reshape(-1))
    bb = bb.at[1, :out_dim].set(b2.reshape(-1))

    return w1p.astype(jnp.bfloat16), w2p.astype(jnp.bfloat16), bb, out_dim


def dqn_forward(x, w1p, w2p, bb, out_dim, *, tile_b=4096):
    """x: (B, in_dim) fp32 -> (B, out_dim) fp32."""
    B, in_dim = x.shape
    h_pad = w1p.shape[1]
    o_pad = w2p.shape[1]

    # Grid-aware batch tile: multiple of 8 sublanes; aim for ~8 grid steps once
    # B is large enough (both TCs on v7x + pipeline depth), capped at tile_b.
    tb = max(8, min(tile_b, _round_up(pl.cdiv(B, 8), 8)))
    grid = (pl.cdiv(B, tb),)

    out = pl.pallas_call(
        dqn_kernel,
        out_shape=jax.ShapeDtypeStruct((B, out_dim), jnp.float32),
        grid=grid,
        in_specs=[
            pl.BlockSpec((tb, in_dim), lambda b: (b, 0)),      # streamed per tile
            pl.BlockSpec((in_dim, h_pad), lambda b: (0, 0)),   # resident
            pl.BlockSpec((h_pad, o_pad), lambda b: (0, 0)),    # resident
            pl.BlockSpec(bb.shape, lambda b: (0, 0)),          # resident biases
        ],
        out_specs=pl.BlockSpec((tb, out_dim), lambda b: (b, 0)),  # true-width writeback
        compiler_params=pltpu.CompilerParams(
            dimension_semantics=("parallel",)),
    )(x, w1p, w2p, bb)
    return out
    # TODO(synk): for the tiny-batch acting path (single grid step), fusing the
    # downstream argmax / epsilon-greedy into this kernel would remove an extra
    # dispatch; kept out to preserve the module's forward() semantics.


def init_dqn_params(key, input_dim, hidden_dim, output_dim):
    # Deterministic init mimicking torch.nn.Linear default (uniform +/- 1/sqrt(fan_in)).
    k1, k2, k3, k4 = jax.random.split(key, 4)
    bound1 = 1.0 / jnp.sqrt(jnp.float32(input_dim))
    bound2 = 1.0 / jnp.sqrt(jnp.float32(hidden_dim))
    w1 = jax.random.uniform(k1, (input_dim, hidden_dim), jnp.float32, -bound1, bound1)
    b1 = jax.random.uniform(k2, (hidden_dim,), jnp.float32, -bound1, bound1)
    w2 = jax.random.uniform(k3, (hidden_dim, output_dim), jnp.float32, -bound2, bound2)
    b2 = jax.random.uniform(k4, (output_dim,), jnp.float32, -bound2, bound2)
    return w1, b1, w2, b2


def _reference(x, w1, b1, w2, b2):
    # Mirrors kernel precision: bf16 matmul operands, fp32 accumulate / bias / ReLU.
    hi = jax.lax.Precision.HIGHEST
    xb = x.astype(jnp.bfloat16).astype(jnp.float32)
    w1b = w1.astype(jnp.bfloat16).astype(jnp.float32)
    w2b = w2.astype(jnp.bfloat16).astype(jnp.float32)
    h = jnp.maximum(jnp.dot(xb, w1b, precision=hi) + b1, 0.0)
    hb = h.astype(jnp.bfloat16).astype(jnp.float32)
    return jnp.dot(hb, w2b, precision=hi) + b2


if __name__ == "__main__":
    key = jax.random.PRNGKey(0)
    input_dim, hidden_dim, output_dim = 16, 64, 4

    kx, kp, kx2 = jax.random.split(key, 3)
    w1, b1, w2, b2 = init_dqn_params(kp, input_dim, hidden_dim, output_dim)
    w1p, w2p, bb, out_dim = prepare_dqn_params(w1, b1, w2, b2)

    # Tiny batch (single grid step, tb > B tail-masking path).
    x_small = jax.random.normal(kx, (2, input_dim), jnp.float32)
    out_small = jax.block_until_ready(dqn_forward(x_small, w1p, w2p, bb, out_dim))
    ref_small = _reference(x_small, w1, b1, w2, b2)
    assert out_small.shape == (2, output_dim)
    assert jnp.allclose(out_small, ref_small, atol=2e-3, rtol=2e-3)

    # Larger, non-multiple batch (multi-step grid + masked tail writeback).
    x_big = jax.random.normal(kx2, (300, input_dim), jnp.float32)
    out_big = jax.block_until_ready(dqn_forward(x_big, w1p, w2p, bb, out_dim))
    ref_big = _reference(x_big, w1, b1, w2, b2)
    assert out_big.shape == (300, output_dim)
    assert jnp.allclose(out_big, ref_big, atol=2e-3, rtol=2e-3)

    print("KERNEL_OK")
</pallas_src>

<mosaic_0001>
module attributes {stable_mosaic.version = 11 : i64} {
  func.func @dqn_kernel(%arg0: i32, %arg1: memref<8x16xf32, #tpu.memory_space<vmem>>, %arg2: memref<16x128xbf16, #tpu.memory_space<vmem>>, %arg3: memref<128x128xbf16, #tpu.memory_space<vmem>>, %arg4: memref<2x128xf32, #tpu.memory_space<vmem>>, %arg5: memref<8x4xf32, #tpu.memory_space<vmem>>) attributes {dimension_semantics = [#tpu.dimension_semantics<parallel>], iteration_bounds = array<i64: 1>, scalar_prefetch = 0 : i64, scratch_operands = 0 : i64, tpu.core_type = #tpu.core_type<tc>, window_params = [{transform_indices = @transform_0, window_bounds = array<i64: 8, 16>}, {pipeline_mode = #tpu.pipeline_mode<synchronous>, transform_indices = @transform_1, window_bounds = array<i64: 16, 128>}, {pipeline_mode = #tpu.pipeline_mode<synchronous>, transform_indices = @transform_2, window_bounds = array<i64: 128, 128>}, {pipeline_mode = #tpu.pipeline_mode<synchronous>, transform_indices = @transform_3, window_bounds = array<i64: 2, 128>}, {transform_indices = @transform_4, window_bounds = array<i64: 8, 4>}]} {
    %c0 = arith.constant 0 : index
    %c0_0 = arith.constant 0 : index
    %0 = vector.load %arg4[%c0, %c0_0] : memref<2x128xf32, #tpu.memory_space<vmem>>, vector<1x128xf32>
    %c1 = arith.constant 1 : index
    %c0_1 = arith.constant 0 : index
    %1 = vector.load %arg4[%c1, %c0_1] : memref<2x128xf32, #tpu.memory_space<vmem>>, vector<1x128xf32>
    %c0_2 = arith.constant 0 : index
    %c0_3 = arith.constant 0 : index
    %2 = vector.load %arg1[%c0_2, %c0_3] : memref<8x16xf32, #tpu.memory_space<vmem>>, vector<8x16xf32>
    %3 = arith.truncf %2 : vector<8x16xf32> to vector<8x16xbf16>
    %c0_4 = arith.constant 0 : index
    %c0_5 = arith.constant 0 : index
    %4 = vector.load %arg2[%c0_4, %c0_5] : memref<16x128xbf16, #tpu.memory_space<vmem>>, vector<16x128xbf16>
    %cst = arith.constant dense<0.000000e+00> : vector<8x128xf32>
    %5 = tpu.matmul %3, %4, %cst {dimension_numbers = #tpu.dot_dimension_numbers<[1], [0], [0], [1], [0, 0, 1, 1], [], []>} : vector<8x16xbf16>, vector<16x128xbf16>, vector<8x128xf32> -> vector<8x128xf32>
    %6 = vector.broadcast %0 : vector<1x128xf32> to vector<8x128xf32>
    %7 = arith.addf %5, %6 : vector<8x128xf32>
    %cst_6 = arith.constant 0.000000e+00 : f32
    %8 = vector.broadcast %cst_6 : f32 to vector<8x128xf32>
    %9 = arith.maximumf %7, %8 : vector<8x128xf32>
    %10 = arith.truncf %9 : vector<8x128xf32> to vector<8x128xbf16>
    %c0_7 = arith.constant 0 : index
    %c0_8 = arith.constant 0 : index
    %11 = vector.load %arg3[%c0_7, %c0_8] : memref<128x128xbf16, #tpu.memory_space<vmem>>, vector<128x128xbf16>
    %cst_9 = arith.constant dense<0.000000e+00> : vector<8x128xf32>
    %12 = tpu.matmul %10, %11, %cst_9 {dimension_numbers = #tpu.dot_dimension_numbers<[1], [0], [0], [1], [0, 0, 1, 1], [], []>} : vector<8x128xbf16>, vector<128x128xbf16>, vector<8x128xf32> -> vector<8x128xf32>
    %13 = vector.broadcast %1 : vector<1x128xf32> to vector<8x128xf32>
    %14 = arith.addf %12, %13 : vector<8x128xf32>
    %15 = vector.extract_strided_slice %14 {offsets = [0, 0], sizes = [8, 4], strides = [1, 1]} : vector<8x128xf32> to vector<8x4xf32>
    %c0_10 = arith.constant 0 : index
    %c0_11 = arith.constant 0 : index
    %16 = vector.load %arg5[%c0_10, %c0_11] : memref<8x4xf32, #tpu.memory_space<vmem>>, vector<8x4xf32>
    tpu.vector_store %arg5[%c0_10, %c0_11], %15 {strides = array<i32>} : memref<8x4xf32, #tpu.memory_space<vmem>>, vector<8x4xf32>,
    return
  }
  func.func @transform_0(%arg0: i32) -> (i32, i32) {
    %c0_i32 = arith.constant 0 : i32
    %c0_i32_0 = arith.constant 0 : i32
    return %arg0, %c0_i32 : i32, i32
  }
  func.func @transform_1(%arg0: i32) -> (i32, i32) {
    %c0_i32 = arith.constant 0 : i32
    %c0_i32_0 = arith.constant 0 : i32
    %c0_i32_1 = arith.constant 0 : i32
    return %c0_i32, %c0_i32_0 : i32, i32
  }
  func.func @transform_2(%arg0: i32) -> (i32, i32) {
    %c0_i32 = arith.constant 0 : i32
    %c0_i32_0 = arith.constant 0 : i32
    %c0_i32_1 = arith.constant 0 : i32
    return %c0_i32, %c0_i32_0 : i32, i32
  }
  func.func @transform_3(%arg0: i32) -> (i32, i32) {
    %c0_i32 = arith.constant 0 : i32
    %c0_i32_0 = arith.constant 0 : i32
    %c0_i32_1 = arith.constant 0 : i32
    return %c0_i32, %c0_i32_0 : i32, i32
  }
  func.func @transform_4(%arg0: i32) -> (i32, i32) {
    %c0_i32 = arith.constant 0 : i32
    %c0_i32_0 = arith.constant 0 : i32
    return %arg0, %c0_i32 : i32, i32
  }
}

</mosaic_0001>

<bundles_post_ra>
// kernel: tpu_custom_call.1
= control target key start
LH: loop header
LB: loop body
LE: loop exit
PB: predicated region body
PF: predicated region fallthrough
CT: control target
= control target key end

     0   :  { %9 = vsyncpa [#allocation3], 0  ;;  %s469_s0 = inlined_call_operand.hbm [shape: f32[2,16], index: 0, kind: input, shape index: {}]   ;;  %s470_s1 = inlined_call_operand.hbm [shape: bf16[16,128], index: 1, kind: input, shape index: {}]   ;;  %s471_s2 = inlined_call_operand.hbm [shape: bf16[128,128], index: 2, kind: input, shape index: {}]   ;;  %s472_s3 = inlined_call_operand.vmem [shape: f32[2,128], index: 3, kind: input, shape index: {}]   ;;  %s473_s4 = inlined_call_operand.hbm [shape: f32[2,4], index: 4, kind: output, shape index: {}]  }
   0x1   :  { %10 = vsyncpa [#allocation6], 0 }
   0x2   :  { %11 = vsyncpa [#allocation4], 0 }
   0x3   :  { %16 = vsyncadd [#allocation3], 96  ;;  %s404_s15 = smov [#allocation5]  }
   0x4   :  { %s29_s16 = sshll.u32 %s404_s15, 4  ;;  %s30_s16 = int_to_ptr.vmem [resolvable:$true] %s29_s16 }
   0x5   :  { %s326_s17 = scalar_lea.vmem %s30_s16, 128  ;;  %p331_p1 = scmp.lt.s32.totalorder %s30_s16, %s30_s16 }
   0x6   :  { %p327_p0 = scmp.ne.s32.totalorder %s30_s16, %s326_s17  ;;  %p332_p2 = scmp.lt.s32.totalorder %s326_s17, %s326_s17 }
   0x8   :  { %p333_p3 = por %p332_p2, %p331_p1 }
   0xa   :  { %p334_p4 = pnand %p333_p3, %p327_p0 }
   0xc   :  { %337 = shalt.err (!%p334_p4)
}
   0xd   :  { %s405_s18 = smov 64   ;;  %s406_s19 = smov 4  }
   0xe   :  { %35 = dma.hbm_to_vmem [thread:$0]  %s470_s1, 128, %s30_s16, [#allocation6], %s405_s18, %s405_s18, %s406_s19  }
   0xf   :  { %s407_s22 = smov [#allocation2]  }
  0x10   :  { %s17_s23 = sshll.u32 %s407_s22, 4  ;;  %s18_s23 = int_to_ptr.vmem [resolvable:$true] %s17_s23 }
  0x11   :  { %s346_s24 = scalar_lea.vmem %s18_s23, 32  ;;  %s350_s25 = scalar_lea.vmem %s18_s23, 128 }
  0x12   :  { %p347_p5 = scmp.ne.s32.totalorder %s18_s23, %s346_s24  ;;  %p351_p6 = scmp.lt.s32.totalorder %s18_s23, %s18_s23 }
  0x13   :  { %p352_p7 = scmp.lt.s32.totalorder %s350_s25, %s346_s24 }
  0x15   :  { %p353_p8 = por %p352_p7, %p351_p6 }
  0x17   :  { %p354_p9 = pnand %p353_p8, %p347_p5 }
  0x19   :  { %357 = shalt.err (!%p354_p9)
}
  0x1a   :  { %s408_s26 = smov 32   ;;  %s409_s27 = smov 2  }
  0x1b   :  { %23 = dma.hbm_to_vmem [thread:$0]  %s469_s0, 32, %s18_s23, [#allocation3], %s408_s26, %s408_s26, %s409_s27  }
  0x1c   :  { %s410_s1 = smov [#allocation7]  }
  0x1d   :  { %s41_s30 = sshll.u32 %s410_s1, 4  ;;  %s42_s30 = int_to_ptr.vmem [resolvable:$true] %s41_s30 }
  0x1e   :  { %s366_s5 = scalar_lea.vmem %s42_s30, 1024  ;;  %p371_p11 = scmp.lt.s32.totalorder %s42_s30, %s42_s30 }
  0x1f   :  { %p367_p10 = scmp.ne.s32.totalorder %s42_s30, %s366_s5  ;;  %p372_p12 = scmp.lt.s32.totalorder %s366_s5, %s366_s5 }
  0x21   :  { %p373_p13 = por %p372_p12, %p371_p11 }
  0x23   :  { %p374_p0 = pnand %p373_p13, %p367_p10 }
  0x25   :  { %377 = shalt.err (!%p374_p0)
}
  0x26   :  { %47 = dma.hbm_to_vmem [thread:$0]  %s471_s2, 1024, %s42_s30, [#allocation6], %s405_s18, %s405_s18, %s406_s19  }
  0x27   :  { %398 = dma.done.wait [#allocation3], 128  }
  0x28   :  { %399 = vsyncadd [#allocation3], 4294967168 }
  0x29   :  { %400 = dma.done.wait [#allocation6], 1152  }
  0x2a   :  { %401 = vsyncadd [#allocation6], 4294966144  ;;  %v411_v0 = vmov 0.0   ;;  %vm412_vm0 = vmmov 0   ;;  %v309_v1 = vld [vmem:[#allocation5] sm:$0xff]   ;;  %v62_v2 = vld [vmem:[#allocation2] sm:$0xff] }
  0x2b   :  { %273 = vmatprep.subr.bf16.mxu0 %v411_v0  ;;  %275 = vmatprep.mubr.msk.bf16.mxu0 %vm412_vm0, %v411_v0  ;;  %v63_v3 = vpack.c.bf16 %v62_v2, %v62_v2  ;;  %vm76_vm1 = vcmask 130048   ;;  %v310_v4 = vld [vmem:[#allocation7 + $0x38] sm:$0xff]   ;;  %v311_v5 = vld [vmem:[#allocation7 + $0x30] sm:$0xff]   ;;  %v312_v6 = vld [vmem:[#allocation7 + $0x28] sm:$0xff]   ;;  %vm230_vm2 = vcmask 31744  }
  0x2c   :  { %279 = vmatprep.subr.bf16.mxu1 %v411_v0  ;;  %295 = vmatprep.mubr.msk.bf16.mxu1 %vm412_vm0, %v411_v0  ;;  %v313_v7 = vld [vmem:[#allocation7 + $0x20] sm:$0xff]   ;;  %v314_v8 = vld [vmem:[#allocation7 + $0x18] sm:$0xff]   ;;  %v315_v9 = vld [vmem:[#allocation7 + $0x10] sm:$0xff]  }
  0x2d   :  { %274 = vmatpush3.bf16.msra.mxu0 %v309_v1  ;;  %280 = vmatpush3.bf16.msra.mxu1 %v310_v4  ;;  %v316_v10 = vld [vmem:[#allocation7 + $0x8] sm:$0xff]   ;;  %v317_v11 = vld [vmem:[#allocation7] sm:$0xff]   ;;  %v250_v12 = vld [vmem:[%s472_s3] ss:$0 sm:$0xff] }
  0x2e   :  { %281 = vmatprep.subr.bf16.mxu1 %v411_v0  ;;  %v253_v20 = vld [vmem:[%s472_s3 + $0x1] ss:$0 sm:$0xff] }
  0x30   :  { %276 = vmatmul.mubr.msk.bf16.vlgmr.msra.gmra.mxu0 %vm76_vm1, %v63_v3 }
  0x31   :  { %282 = vmatpush3.bf16.msra.mxu1 %v311_v5 }
  0x32   :  { %283 = vmatprep.subr.bf16.mxu1 %v411_v0 }
  0x35   :  { %284 = vmatpush3.bf16.msra.mxu1 %v312_v6 }
  0x36   :  { %285 = vmatprep.subr.bf16.mxu1 %v411_v0 }
  0x39   :  { %286 = vmatpush3.bf16.msra.mxu1 %v313_v7 }
  0x3a   :  { %287 = vmatprep.subr.bf16.mxu1 %v411_v0 }
  0x3d   :  { %288 = vmatpush3.bf16.msra.mxu1 %v314_v8 }
  0x3e   :  { %289 = vmatprep.subr.bf16.mxu1 %v411_v0 }
  0x41   :  { %290 = vmatpush3.bf16.msra.mxu1 %v315_v9 }
  0x42   :  { %291 = vmatprep.subr.bf16.mxu1 %v411_v0 }
  0x45   :  { %292 = vmatpush3.bf16.msra.mxu1 %v316_v10 }
  0x46   :  { %293 = vmatprep.subr.bf16.mxu1 %v411_v0 }
  0x49   :  { %294 = vmatpush3.bf16.msra.mxu1 %v317_v11 }
  0xf0   :  { %v114_v13 = vpop.f32.mrf.mxu0 }
  0xf1   :  { %v115_v14 = vadd.f32 %v250_v12, %v114_v13 }
  0xf2   :  { %v277_v15 = vpop.f32.mrf.mxu0 }
  0xf3   :  { %v120_v16 = vmax.f32 %v115_v14, 0.0 }
  0xf4   :  { %v117_v17 = vpop.f32.mrf.mxu0 }
  0xf5   :  { %v121_v18 = vpack.c.bf16 %v120_v16, %v120_v16 }
  0xf6   :  { %v278_v19 = vpop.f32.mrf.mxu0 }
  0xf7   :  { %296 = vmatmul.mubr.bf16.vlgmr.msra.gmra.mxu1 %v121_v18 }
 0x1b7   :  { %v224_v21 = vpop.f32.mrf.mxu1 }
 0x1b8   :  { %v225_v22 = vadd.f32 %v253_v20, %v224_v21 }
 0x1b9   :  { %v297_v23 = vpop.f32.mrf.mxu1 }
 0x1ba   :  { %231 = vst.msk [vmem:[#allocation8] sm:$0xff] %vm230_vm2, %v225_v22 }
 0x1bb   :  { %v227_v24 = vpop.f32.mrf.mxu1 }
 0x1bd   :  { %v298_v25 = vpop.f32.mrf.mxu1 }
 0x1be   :  { %236 = vsyncadd [#allocation4], 96  ;;  %s413_s10 = smov [#allocation8]  }
 0x1bf   :  { %s237_s11 = sshll.u32 %s413_s10, 4  ;;  %s238_s11 = int_to_ptr.vmem [resolvable:$true] %s237_s11 }
 0x1c0   :  { %s378_s12 = scalar_lea.vmem %s238_s11, 32  ;;  %s382_s13 = scalar_lea.vmem %s238_s11, 128 }
 0x1c1   :  { %p379_p1 = scmp.ne.s32.totalorder %s238_s11, %s378_s12  ;;  %p383_p2 = scmp.lt.s32.totalorder %s238_s11, %s238_s11 }
 0x1c2   :  { %p384_p3 = scmp.lt.s32.totalorder %s382_s13, %s378_s12 }
 0x1c4   :  { %p385_p4 = por %p384_p3, %p383_p2 }
 0x1c6   :  { %p386_p5 = pnand %p385_p4, %p379_p1 }
 0x1c8   :  { %389 = shalt.err (!%p386_p5)
}
 0x1c9   :  { %243 = dma.vmem_to_hbm [thread:$0]  %s238_s11, 32, %s473_s4, [#allocation4], %s408_s26, %s408_s26, %s409_s27  }
 0x1ca   :  { %402 = dma.done.wait [#allocation4], 128  }
 0x1cb   :  { %403 = vsyncadd [#allocation4], 4294967168 }
 0x1cc   :  { %247 = vsyncpa [#allocation3], 1 }
 0x1cd   :  { %248 = vsyncpa [#allocation6], 1 }
 0x1ce   :  { %249 = vsyncpa [#allocation4], 1 }

</bundles_post_ra>
